<compile_context>
chip_gen: v6e
topology: v6e:2x2x1
jax: 0.10.0
libtpu: 0.0.40
codegen_flags: <defaults>
</compile_context>

<pallas_src>
import functools

import jax
import jax.numpy as jnp
import numpy as np
from jax.experimental import pallas as pl
from jax.experimental.pallas import tpu as pltpu

SNN_THRESHOLD = 1.0   # snn.Leaky default threshold
SNN_BETA = 0.9        # fresh zero membrane: mem = beta*0 + h = h (beta drops out)
LANE = 128


def _snn_lstm_kernel(x_ref, wih_ref, whh_ref, b_ref, wfc_ref, bfc_ref,
                     out_ref, hlast_ref):
    TB, D_in = x_ref.shape
    H, G = whh_ref.shape          # G = 4H, gate order i, f, g, o
    B = out_ref.shape[0]
    T = TB // B

    # Hoist weight/bias loads out of the time loop (JAX does not CSE these).
    wih = wih_ref[...]            # (D_in, 4H)
    whh = whh_ref[...]            # (H, 4H)
    b = b_ref[...]                # (1, 4H) = b_ih + b_hh (pre-combined)

    # --- Input projection for ALL time steps in ONE wide MXU call, off the serial
    # recurrence chain. Rows t*B .. (t+1)*B-1 are the contribution of x_t (bias folded in).
    xproj = jnp.dot(x_ref[...], wih, preferred_element_type=jnp.float32) + b   # (T*B, 4H)

    h = jnp.zeros((B, H), jnp.float32)
    c = jnp.zeros((B, H), jnp.float32)

    # Static unroll: per step only ONE MXU matmul (h @ W_hh) and 3 tanh pushes remain
    # on the serial chain. xproj slices are static & sublane-aligned (B multiple of 8).
    for t in range(T):
        gates = xproj[t * B:(t + 1) * B, :] + jnp.dot(
            h, whh, preferred_element_type=jnp.float32)            # (B, 4H), lane-dense
        # Full-vreg nonlinearities first (sigmoid via a single tanh), then lane slices.
        sig = 0.5 * jnp.tanh(0.5 * gates) + 0.5                     # i, f, o gates
        tnh = jnp.tanh(gates)                                       # g gate
        i_g = sig[:, 0 * H:1 * H]
        f_g = sig[:, 1 * H:2 * H]
        g_g = tnh[:, 2 * H:3 * H]
        o_g = sig[:, 3 * H:4 * H]
        c = f_g * c + i_g * g_g
        h = o_g * jnp.tanh(c)

    # snn.Leaky single step from a fresh zero membrane: mem = h, spike = heaviside(mem - thr).
    spk = (h > SNN_THRESHOLD).astype(jnp.float32)

    # Final Linear on the last time step only; output padded lane-dense in the wrapper.
    out_ref[...] = (jnp.dot(spk, wfc_ref[...], preferred_element_type=jnp.float32)
                    + bfc_ref[...]).astype(out_ref.dtype)

    # Diagnostic last hidden state, padded to a full 128-lane vreg (dense vst). Once,
    # off the critical path.
    pad_w = hlast_ref.shape[1] - H
    if pad_w:
        h_full = jnp.concatenate([h, jnp.zeros((B, pad_w), jnp.float32)], axis=-1)
    else:
        h_full = h
    hlast_ref[...] = h_full.astype(hlast_ref.dtype)


@functools.partial(jax.jit, static_argnames=("output_dim",))
def snn_lstm_forward(x, w_ih, w_hh, b_ih, b_hh, w_fc, b_fc, *, output_dim):
    """x: (B, T, D_in) batch_first. Weights in PyTorch layout:
    w_ih (4H, D_in), w_hh (4H, H), b_ih/b_hh (4H,), w_fc (D_out, H), b_fc (D_out,).
    Returns (output (B, D_out), h_last (B, H))."""
    B, T, D_in = x.shape
    H = w_hh.shape[1]
    G = 4 * H

    # Layout plumbing (negligible at these sizes): time-major, flattened-(T*B) x so the
    # kernel's input projection is a single (T*B, D_in) x (D_in, 4H) matmul.
    x2d = jnp.transpose(x, (1, 0, 2)).reshape(T * B, D_in).astype(jnp.float32)
    wih = jnp.transpose(w_ih).astype(jnp.float32)     # (D_in, 4H)
    whh = jnp.transpose(w_hh).astype(jnp.float32)     # (H, 4H)
    b = (b_ih + b_hh).astype(jnp.float32)[None, :]    # (1, 4H)

    # Lane-dense (multiple-of-128) padded outputs; sliced back after the call.
    d_pad = max(LANE, ((output_dim + LANE - 1) // LANE) * LANE)
    h_pad = max(LANE, ((H + LANE - 1) // LANE) * LANE)
    wfc = jnp.zeros((H, d_pad), jnp.float32).at[:, :output_dim].set(
        jnp.transpose(w_fc).astype(jnp.float32))
    bfc = jnp.zeros((1, d_pad), jnp.float32).at[:, :output_dim].set(
        b_fc.astype(jnp.float32)[None, :])

    grid_spec = pltpu.PrefetchScalarGridSpec(
        num_scalar_prefetch=0,
        grid=(1,),                                            # single invocation, all resident
        in_specs=[
            pl.BlockSpec((T * B, D_in), lambda i: (0, 0)),    # x (time-major, flattened)
            pl.BlockSpec((D_in, G), lambda i: (0, 0)),        # W_ih^T
            pl.BlockSpec((H, G), lambda i: (0, 0)),           # W_hh^T
            pl.BlockSpec((1, G), lambda i: (0, 0)),           # b_ih + b_hh
            pl.BlockSpec((H, d_pad), lambda i: (0, 0)),       # W_fc^T (padded)
            pl.BlockSpec((1, d_pad), lambda i: (0, 0)),       # b_fc (padded)
        ],
        out_specs=[
            pl.BlockSpec((B, d_pad), lambda i: (0, 0)),       # output (lane-dense)
            pl.BlockSpec((B, h_pad), lambda i: (0, 0)),       # last hidden (lane-dense)
        ],
    )
    out_pad, hlast_pad = pl.pallas_call(
        _snn_lstm_kernel,
        out_shape=(jax.ShapeDtypeStruct((B, d_pad), jnp.float32),
                   jax.ShapeDtypeStruct((B, h_pad), jnp.float32)),
        grid_spec=grid_spec,
        # NOTE(v7x): if B / #sequences grows, add a leading 'parallel' grid axis over
        # batch groups to use both TensorCores; pointless at B=8.
        compiler_params=pltpu.CompilerParams(dimension_semantics=("arbitrary",)),
    )(x2d, wih, whh, b, wfc, bfc)
    return out_pad[:, :output_dim], hlast_pad[:, :H]


# ---------------- deterministic parameter init (PyTorch-style, with L1 pruning on fc) ---


def prune_l1_unstructured(w, amount=0.4):
    """Zero the `amount` fraction of smallest-|w| entries (mimics torch prune.l1_unstructured)."""
    flat = np.asarray(w, dtype=np.float32).ravel().copy()
    k = int(round(amount * flat.size))
    if k:
        idx = np.argsort(np.abs(flat), kind="stable")[:k]
        flat[idx] = 0.0
    return flat.reshape(np.asarray(w).shape)


def build_params(key, input_dim, hidden_dim, output_dim):
    bound = 1.0 / np.sqrt(hidden_dim)
    ks = jax.random.split(key, 6)

    def u(k, shape):
        return np.asarray(jax.random.uniform(k, shape, jnp.float32, -bound, bound))

    w_ih = u(ks[0], (4 * hidden_dim, input_dim))    # PyTorch layout; gate order i, f, g, o
    w_hh = u(ks[1], (4 * hidden_dim, hidden_dim))
    b_ih = u(ks[2], (4 * hidden_dim,))
    b_hh = u(ks[3], (4 * hidden_dim,))
    w_fc = u(ks[4], (output_dim, hidden_dim))
    b_fc = u(ks[5], (output_dim,))
    # apply_pruning() only touches nn.Linear modules -> only fc.weight is pruned
    # (nn.LSTM is not an nn.Linear; snn.Leaky has no Linear).
    w_fc = prune_l1_unstructured(w_fc, amount=0.4)
    return dict(w_ih=jnp.asarray(w_ih), w_hh=jnp.asarray(w_hh),
                b_ih=jnp.asarray(b_ih), b_hh=jnp.asarray(b_hh),
                w_fc=jnp.asarray(w_fc), b_fc=jnp.asarray(b_fc))


def reference_forward(x, p):
    """Pure-JAX reference matching the PyTorch forward."""
    B, T, _ = x.shape
    H = p["w_hh"].shape[1]
    wih, whh = p["w_ih"].T, p["w_hh"].T
    b = p["b_ih"] + p["b_hh"]
    h = jnp.zeros((B, H), jnp.float32)
    c = jnp.zeros((B, H), jnp.float32)
    for t in range(T):
        gates = x[:, t, :] @ wih + h @ whh + b
        i = jax.nn.sigmoid(gates[:, :H])
        f = jax.nn.sigmoid(gates[:, H:2 * H])
        g = jnp.tanh(gates[:, 2 * H:3 * H])
        o = jax.nn.sigmoid(gates[:, 3 * H:])
        c = f * c + i * g
        h = o * jnp.tanh(c)
    spk = (h > SNN_THRESHOLD).astype(jnp.float32)
    out = spk @ p["w_fc"].T + p["b_fc"]
    return out, h


if __name__ == "__main__":
    batch, seq_len, input_dim, hidden_dim, output_dim = 8, 8, 16, 32, 8

    key = jax.random.PRNGKey(0)
    kx, kp = jax.random.split(key)
    x = jax.random.normal(kx, (batch, seq_len, input_dim), jnp.float32)
    params = build_params(kp, input_dim, hidden_dim, output_dim)

    out, h_last = snn_lstm_forward(
        x, params["w_ih"], params["w_hh"], params["b_ih"], params["b_hh"],
        params["w_fc"], params["b_fc"], output_dim=output_dim)
    out, h_last = jax.block_until_ready((out, h_last))

    ref_out, ref_h = reference_forward(x, params)
    np.testing.assert_allclose(np.asarray(h_last), np.asarray(ref_h), rtol=1e-4, atol=1e-4)
    np.testing.assert_allclose(np.asarray(out), np.asarray(ref_out), rtol=1e-4, atol=1e-4)

    print("KERNEL_OK")
</pallas_src>

<mosaic_0001>
module attributes {stable_mosaic.version = 11 : i64} {
  func.func @_snn_lstm_kernel(%arg0: i32, %arg1: memref<64x16xf32, #tpu.memory_space<vmem>>, %arg2: memref<16x128xf32, #tpu.memory_space<vmem>>, %arg3: memref<32x128xf32, #tpu.memory_space<vmem>>, %arg4: memref<1x128xf32, #tpu.memory_space<vmem>>, %arg5: memref<32x128xf32, #tpu.memory_space<vmem>>, %arg6: memref<1x128xf32, #tpu.memory_space<vmem>>, %arg7: memref<8x128xf32, #tpu.memory_space<vmem>>, %arg8: memref<8x128xf32, #tpu.memory_space<vmem>>) attributes {dimension_semantics = [#tpu.dimension_semantics<arbitrary>], iteration_bounds = array<i64: 1>, scalar_prefetch = 0 : i64, scratch_operands = 0 : i64, tpu.core_type = #tpu.core_type<tc>, window_params = [{pipeline_mode = #tpu.pipeline_mode<synchronous>, transform_indices = @transform_0, window_bounds = array<i64: 64, 16>}, {pipeline_mode = #tpu.pipeline_mode<synchronous>, transform_indices = @transform_1, window_bounds = array<i64: 16, 128>}, {pipeline_mode = #tpu.pipeline_mode<synchronous>, transform_indices = @transform_2, window_bounds = array<i64: 32, 128>}, {pipeline_mode = #tpu.pipeline_mode<synchronous>, transform_indices = @transform_3, window_bounds = array<i64: 1, 128>}, {pipeline_mode = #tpu.pipeline_mode<synchronous>, transform_indices = @transform_4, window_bounds = array<i64: 32, 128>}, {pipeline_mode = #tpu.pipeline_mode<synchronous>, transform_indices = @transform_5, window_bounds = array<i64: 1, 128>}, {pipeline_mode = #tpu.pipeline_mode<synchronous>, transform_indices = @transform_6, window_bounds = array<i64: 8, 128>}, {pipeline_mode = #tpu.pipeline_mode<synchronous>, transform_indices = @transform_7, window_bounds = array<i64: 8, 128>}]} {
    %c0 = arith.constant 0 : index
    %c0_0 = arith.constant 0 : index
    %0 = vector.load %arg2[%c0, %c0_0] : memref<16x128xf32, #tpu.memory_space<vmem>>, vector<16x128xf32>
    %c0_1 = arith.constant 0 : index
    %c0_2 = arith.constant 0 : index
    %1 = vector.load %arg3[%c0_1, %c0_2] : memref<32x128xf32, #tpu.memory_space<vmem>>, vector<32x128xf32>
    %c0_3 = arith.constant 0 : index
    %c0_4 = arith.constant 0 : index
    %2 = vector.load %arg4[%c0_3, %c0_4] : memref<1x128xf32, #tpu.memory_space<vmem>>, vector<1x128xf32>
    %c0_5 = arith.constant 0 : index
    %c0_6 = arith.constant 0 : index
    %3 = vector.load %arg1[%c0_5, %c0_6] : memref<64x16xf32, #tpu.memory_space<vmem>>, vector<64x16xf32>
    %cst = arith.constant dense<0.000000e+00> : vector<64x128xf32>
    %4 = tpu.matmul %3, %0, %cst {dimension_numbers = #tpu.dot_dimension_numbers<[1], [0], [0], [1], [0, 0, 1, 1], [], []>} : vector<64x16xf32>, vector<16x128xf32>, vector<64x128xf32> -> vector<64x128xf32>
    %5 = vector.broadcast %2 : vector<1x128xf32> to vector<64x128xf32>
    %6 = arith.addf %4, %5 : vector<64x128xf32>
    %cst_7 = arith.constant 0.000000e+00 : f32
    %7 = vector.broadcast %cst_7 : f32 to vector<8x32xf32>
    %cst_8 = arith.constant 0.000000e+00 : f32
    %8 = vector.broadcast %cst_8 : f32 to vector<8x32xf32>
    %9 = vector.extract_strided_slice %6 {offsets = [0, 0], sizes = [8, 128], strides = [1, 1]} : vector<64x128xf32> to vector<8x128xf32>
    %cst_9 = arith.constant dense<0.000000e+00> : vector<8x128xf32>
    %10 = tpu.matmul %7, %1, %cst_9 {dimension_numbers = #tpu.dot_dimension_numbers<[1], [0], [0], [1], [0, 0, 1, 1], [], []>} : vector<8x32xf32>, vector<32x128xf32>, vector<8x128xf32> -> vector<8x128xf32>
    %11 = arith.addf %9, %10 : vector<8x128xf32>
    %cst_10 = arith.constant 5.000000e-01 : f32
    %12 = vector.broadcast %cst_10 : f32 to vector<8x128xf32>
    %13 = arith.mulf %12, %11 : vector<8x128xf32>
    %14 = math.tanh %13 : vector<8x128xf32>
    %cst_11 = arith.constant 5.000000e-01 : f32
    %15 = vector.broadcast %cst_11 : f32 to vector<8x128xf32>
    %16 = arith.mulf %15, %14 : vector<8x128xf32>
    %cst_12 = arith.constant 5.000000e-01 : f32
    %17 = vector.broadcast %cst_12 : f32 to vector<8x128xf32>
    %18 = arith.addf %16, %17 : vector<8x128xf32>
    %19 = math.tanh %11 : vector<8x128xf32>
    %20 = vector.extract_strided_slice %18 {offsets = [0, 0], sizes = [8, 32], strides = [1, 1]} : vector<8x128xf32> to vector<8x32xf32>
    %21 = vector.extract_strided_slice %18 {offsets = [0, 32], sizes = [8, 32], strides = [1, 1]} : vector<8x128xf32> to vector<8x32xf32>
    %22 = vector.extract_strided_slice %19 {offsets = [0, 64], sizes = [8, 32], strides = [1, 1]} : vector<8x128xf32> to vector<8x32xf32>
    %23 = vector.extract_strided_slice %18 {offsets = [0, 96], sizes = [8, 32], strides = [1, 1]} : vector<8x128xf32> to vector<8x32xf32>
    %24 = arith.mulf %21, %8 : vector<8x32xf32>
    %25 = arith.mulf %20, %22 : vector<8x32xf32>
    %26 = arith.addf %24, %25 : vector<8x32xf32>
    %27 = math.tanh %26 : vector<8x32xf32>
    %28 = arith.mulf %23, %27 : vector<8x32xf32>
    %29 = vector.extract_strided_slice %6 {offsets = [8, 0], sizes = [8, 128], strides = [1, 1]} : vector<64x128xf32> to vector<8x128xf32>
    %cst_13 = arith.constant dense<0.000000e+00> : vector<8x128xf32>
    %30 = tpu.matmul %28, %1, %cst_13 {dimension_numbers = #tpu.dot_dimension_numbers<[1], [0], [0], [1], [0, 0, 1, 1], [], []>} : vector<8x32xf32>, vector<32x128xf32>, vector<8x128xf32> -> vector<8x128xf32>
    %31 = arith.addf %29, %30 : vector<8x128xf32>
    %cst_14 = arith.constant 5.000000e-01 : f32
    %32 = vector.broadcast %cst_14 : f32 to vector<8x128xf32>
    %33 = arith.mulf %32, %31 : vector<8x128xf32>
    %34 = math.tanh %33 : vector<8x128xf32>
    %cst_15 = arith.constant 5.000000e-01 : f32
    %35 = vector.broadcast %cst_15 : f32 to vector<8x128xf32>
    %36 = arith.mulf %35, %34 : vector<8x128xf32>
    %cst_16 = arith.constant 5.000000e-01 : f32
    %37 = vector.broadcast %cst_16 : f32 to vector<8x128xf32>
    %38 = arith.addf %36, %37 : vector<8x128xf32>
    %39 = math.tanh %31 : vector<8x128xf32>
    %40 = vector.extract_strided_slice %38 {offsets = [0, 0], sizes = [8, 32], strides = [1, 1]} : vector<8x128xf32> to vector<8x32xf32>
    %41 = vector.extract_strided_slice %38 {offsets = [0, 32], sizes = [8, 32], strides = [1, 1]} : vector<8x128xf32> to vector<8x32xf32>
    %42 = vector.extract_strided_slice %39 {offsets = [0, 64], sizes = [8, 32], strides = [1, 1]} : vector<8x128xf32> to vector<8x32xf32>
    %43 = vector.extract_strided_slice %38 {offsets = [0, 96], sizes = [8, 32], strides = [1, 1]} : vector<8x128xf32> to vector<8x32xf32>
    %44 = arith.mulf %41, %26 : vector<8x32xf32>
    %45 = arith.mulf %40, %42 : vector<8x32xf32>
    %46 = arith.addf %44, %45 : vector<8x32xf32>
    %47 = math.tanh %46 : vector<8x32xf32>
    %48 = arith.mulf %43, %47 : vector<8x32xf32>
    %49 = vector.extract_strided_slice %6 {offsets = [16, 0], sizes = [8, 128], strides = [1, 1]} : vector<64x128xf32> to vector<8x128xf32>
    %cst_17 = arith.constant dense<0.000000e+00> : vector<8x128xf32>
    %50 = tpu.matmul %48, %1, %cst_17 {dimension_numbers = #tpu.dot_dimension_numbers<[1], [0], [0], [1], [0, 0, 1, 1], [], []>} : vector<8x32xf32>, vector<32x128xf32>, vector<8x128xf32> -> vector<8x128xf32>
    %51 = arith.addf %49, %50 : vector<8x128xf32>
    %cst_18 = arith.constant 5.000000e-01 : f32
    %52 = vector.broadcast %cst_18 : f32 to vector<8x128xf32>
    %53 = arith.mulf %52, %51 : vector<8x128xf32>
    %54 = math.tanh %53 : vector<8x128xf32>
    %cst_19 = arith.constant 5.000000e-01 : f32
    %55 = vector.broadcast %cst_19 : f32 to vector<8x128xf32>
    %56 = arith.mulf %55, %54 : vector<8x128xf32>
    %cst_20 = arith.constant 5.000000e-01 : f32
    %57 = vector.broadcast %cst_20 : f32 to vector<8x128xf32>
    %58 = arith.addf %56, %57 : vector<8x128xf32>
    %59 = math.tanh %51 : vector<8x128xf32>
    %60 = vector.extract_strided_slice %58 {offsets = [0, 0], sizes = [8, 32], strides = [1, 1]} : vector<8x128xf32> to vector<8x32xf32>
    %61 = vector.extract_strided_slice %58 {offsets = [0, 32], sizes = [8, 32], strides = [1, 1]} : vector<8x128xf32> to vector<8x32xf32>
    %62 = vector.extract_strided_slice %59 {offsets = [0, 64], sizes = [8, 32], strides = [1, 1]} : vector<8x128xf32> to vector<8x32xf32>
    %63 = vector.extract_strided_slice %58 {offsets = [0, 96], sizes = [8, 32], strides = [1, 1]} : vector<8x128xf32> to vector<8x32xf32>
    %64 = arith.mulf %61, %46 : vector<8x32xf32>
    %65 = arith.mulf %60, %62 : vector<8x32xf32>
    %66 = arith.addf %64, %65 : vector<8x32xf32>
    %67 = math.tanh %66 : vector<8x32xf32>
    %68 = arith.mulf %63, %67 : vector<8x32xf32>
    %69 = vector.extract_strided_slice %6 {offsets = [24, 0], sizes = [8, 128], strides = [1, 1]} : vector<64x128xf32> to vector<8x128xf32>
    %cst_21 = arith.constant dense<0.000000e+00> : vector<8x128xf32>
    %70 = tpu.matmul %68, %1, %cst_21 {dimension_numbers = #tpu.dot_dimension_numbers<[1], [0], [0], [1], [0, 0, 1, 1], [], []>} : vector<8x32xf32>, vector<32x128xf32>, vector<8x128xf32> -> vector<8x128xf32>
    %71 = arith.addf %69, %70 : vector<8x128xf32>
    %cst_22 = arith.constant 5.000000e-01 : f32
    %72 = vector.broadcast %cst_22 : f32 to vector<8x128xf32>
    %73 = arith.mulf %72, %71 : vector<8x128xf32>
    %74 = math.tanh %73 : vector<8x128xf32>
    %cst_23 = arith.constant 5.000000e-01 : f32
    %75 = vector.broadcast %cst_23 : f32 to vector<8x128xf32>
    %76 = arith.mulf %75, %74 : vector<8x128xf32>
    %cst_24 = arith.constant 5.000000e-01 : f32
    %77 = vector.broadcast %cst_24 : f32 to vector<8x128xf32>
    %78 = arith.addf %76, %77 : vector<8x128xf32>
    %79 = math.tanh %71 : vector<8x128xf32>
    %80 = vector.extract_strided_slice %78 {offsets = [0, 0], sizes = [8, 32], strides = [1, 1]} : vector<8x128xf32> to vector<8x32xf32>
    %81 = vector.extract_strided_slice %78 {offsets = [0, 32], sizes = [8, 32], strides = [1, 1]} : vector<8x128xf32> to vector<8x32xf32>
    %82 = vector.extract_strided_slice %79 {offsets = [0, 64], sizes = [8, 32], strides = [1, 1]} : vector<8x128xf32> to vector<8x32xf32>
    %83 = vector.extract_strided_slice %78 {offsets = [0, 96], sizes = [8, 32], strides = [1, 1]} : vector<8x128xf32> to vector<8x32xf32>
    %84 = arith.mulf %81, %66 : vector<8x32xf32>
    %85 = arith.mulf %80, %82 : vector<8x32xf32>
    %86 = arith.addf %84, %85 : vector<8x32xf32>
    %87 = math.tanh %86 : vector<8x32xf32>
    %88 = arith.mulf %83, %87 : vector<8x32xf32>
    %89 = vector.extract_strided_slice %6 {offsets = [32, 0], sizes = [8, 128], strides = [1, 1]} : vector<64x128xf32> to vector<8x128xf32>
    %cst_25 = arith.constant dense<0.000000e+00> : vector<8x128xf32>
    %90 = tpu.matmul %88, %1, %cst_25 {dimension_numbers = #tpu.dot_dimension_numbers<[1], [0], [0], [1], [0, 0, 1, 1], [], []>} : vector<8x32xf32>, vector<32x128xf32>, vector<8x128xf32> -> vector<8x128xf32>
    %91 = arith.addf %89, %90 : vector<8x128xf32>
    %cst_26 = arith.constant 5.000000e-01 : f32
    %92 = vector.broadcast %cst_26 : f32 to vector<8x128xf32>
    %93 = arith.mulf %92, %91 : vector<8x128xf32>
    %94 = math.tanh %93 : vector<8x128xf32>
    %cst_27 = arith.constant 5.000000e-01 : f32
    %95 = vector.broadcast %cst_27 : f32 to vector<8x128xf32>
    %96 = arith.mulf %95, %94 : vector<8x128xf32>
    %cst_28 = arith.constant 5.000000e-01 : f32
    %97 = vector.broadcast %cst_28 : f32 to vector<8x128xf32>
    %98 = arith.addf %96, %97 : vector<8x128xf32>
    %99 = math.tanh %91 : vector<8x128xf32>
    %100 = vector.extract_strided_slice %98 {offsets = [0, 0], sizes = [8, 32], strides = [1, 1]} : vector<8x128xf32> to vector<8x32xf32>
    %101 = vector.extract_strided_slice %98 {offsets = [0, 32], sizes = [8, 32], strides = [1, 1]} : vector<8x128xf32> to vector<8x32xf32>
    %102 = vector.extract_strided_slice %99 {offsets = [0, 64], sizes = [8, 32], strides = [1, 1]} : vector<8x128xf32> to vector<8x32xf32>
    %103 = vector.extract_strided_slice %98 {offsets = [0, 96], sizes = [8, 32], strides = [1, 1]} : vector<8x128xf32> to vector<8x32xf32>
    %104 = arith.mulf %101, %86 : vector<8x32xf32>
    %105 = arith.mulf %100, %102 : vector<8x32xf32>
    %106 = arith.addf %104, %105 : vector<8x32xf32>
    %107 = math.tanh %106 : vector<8x32xf32>
    %108 = arith.mulf %103, %107 : vector<8x32xf32>
    %109 = vector.extract_strided_slice %6 {offsets = [40, 0], sizes = [8, 128], strides = [1, 1]} : vector<64x128xf32> to vector<8x128xf32>
    %cst_29 = arith.constant dense<0.000000e+00> : vector<8x128xf32>
    %110 = tpu.matmul %108, %1, %cst_29 {dimension_numbers = #tpu.dot_dimension_numbers<[1], [0], [0], [1], [0, 0, 1, 1], [], []>} : vector<8x32xf32>, vector<32x128xf32>, vector<8x128xf32> -> vector<8x128xf32>
    %111 = arith.addf %109, %110 : vector<8x128xf32>
    %cst_30 = arith.constant 5.000000e-01 : f32
    %112 = vector.broadcast %cst_30 : f32 to vector<8x128xf32>
    %113 = arith.mulf %112, %111 : vector<8x128xf32>
    %114 = math.tanh %113 : vector<8x128xf32>
    %cst_31 = arith.constant 5.000000e-01 : f32
    %115 = vector.broadcast %cst_31 : f32 to vector<8x128xf32>
    %116 = arith.mulf %115, %114 : vector<8x128xf32>
    %cst_32 = arith.constant 5.000000e-01 : f32
    %117 = vector.broadcast %cst_32 : f32 to vector<8x128xf32>
    %118 = arith.addf %116, %117 : vector<8x128xf32>
    %119 = math.tanh %111 : vector<8x128xf32>
    %120 = vector.extract_strided_slice %118 {offsets = [0, 0], sizes = [8, 32], strides = [1, 1]} : vector<8x128xf32> to vector<8x32xf32>
    %121 = vector.extract_strided_slice %118 {offsets = [0, 32], sizes = [8, 32], strides = [1, 1]} : vector<8x128xf32> to vector<8x32xf32>
    %122 = vector.extract_strided_slice %119 {offsets = [0, 64], sizes = [8, 32], strides = [1, 1]} : vector<8x128xf32> to vector<8x32xf32>
    %123 = vector.extract_strided_slice %118 {offsets = [0, 96], sizes = [8, 32], strides = [1, 1]} : vector<8x128xf32> to vector<8x32xf32>
    %124 = arith.mulf %121, %106 : vector<8x32xf32>
    %125 = arith.mulf %120, %122 : vector<8x32xf32>
    %126 = arith.addf %124, %125 : vector<8x32xf32>
    %127 = math.tanh %126 : vector<8x32xf32>
    %128 = arith.mulf %123, %127 : vector<8x32xf32>
    %129 = vector.extract_strided_slice %6 {offsets = [48, 0], sizes = [8, 128], strides = [1, 1]} : vector<64x128xf32> to vector<8x128xf32>
    %cst_33 = arith.constant dense<0.000000e+00> : vector<8x128xf32>
    %130 = tpu.matmul %128, %1, %cst_33 {dimension_numbers = #tpu.dot_dimension_numbers<[1], [0], [0], [1], [0, 0, 1, 1], [], []>} : vector<8x32xf32>, vector<32x128xf32>, vector<8x128xf32> -> vector<8x128xf32>
    %131 = arith.addf %129, %130 : vector<8x128xf32>
    %cst_34 = arith.constant 5.000000e-01 : f32
    %132 = vector.broadcast %cst_34 : f32 to vector<8x128xf32>
    %133 = arith.mulf %132, %131 : vector<8x128xf32>
    %134 = math.tanh %133 : vector<8x128xf32>
    %cst_35 = arith.constant 5.000000e-01 : f32
    %135 = vector.broadcast %cst_35 : f32 to vector<8x128xf32>
    %136 = arith.mulf %135, %134 : vector<8x128xf32>
    %cst_36 = arith.constant 5.000000e-01 : f32
    %137 = vector.broadcast %cst_36 : f32 to vector<8x128xf32>
    %138 = arith.addf %136, %137 : vector<8x128xf32>
    %139 = math.tanh %131 : vector<8x128xf32>
    %140 = vector.extract_strided_slice %138 {offsets = [0, 0], sizes = [8, 32], strides = [1, 1]} : vector<8x128xf32> to vector<8x32xf32>
    %141 = vector.extract_strided_slice %138 {offsets = [0, 32], sizes = [8, 32], strides = [1, 1]} : vector<8x128xf32> to vector<8x32xf32>
    %142 = vector.extract_strided_slice %139 {offsets = [0, 64], sizes = [8, 32], strides = [1, 1]} : vector<8x128xf32> to vector<8x32xf32>
    %143 = vector.extract_strided_slice %138 {offsets = [0, 96], sizes = [8, 32], strides = [1, 1]} : vector<8x128xf32> to vector<8x32xf32>
    %144 = arith.mulf %141, %126 : vector<8x32xf32>
    %145 = arith.mulf %140, %142 : vector<8x32xf32>
    %146 = arith.addf %144, %145 : vector<8x32xf32>
    %147 = math.tanh %146 : vector<8x32xf32>
    %148 = arith.mulf %143, %147 : vector<8x32xf32>
    %149 = vector.extract_strided_slice %6 {offsets = [56, 0], sizes = [8, 128], strides = [1, 1]} : vector<64x128xf32> to vector<8x128xf32>
    %cst_37 = arith.constant dense<0.000000e+00> : vector<8x128xf32>
    %150 = tpu.matmul %148, %1, %cst_37 {dimension_numbers = #tpu.dot_dimension_numbers<[1], [0], [0], [1], [0, 0, 1, 1], [], []>} : vector<8x32xf32>, vector<32x128xf32>, vector<8x128xf32> -> vector<8x128xf32>
    %151 = arith.addf %149, %150 : vector<8x128xf32>
    %cst_38 = arith.constant 5.000000e-01 : f32
    %152 = vector.broadcast %cst_38 : f32 to vector<8x128xf32>
    %153 = arith.mulf %152, %151 : vector<8x128xf32>
    %154 = math.tanh %153 : vector<8x128xf32>
    %cst_39 = arith.constant 5.000000e-01 : f32
    %155 = vector.broadcast %cst_39 : f32 to vector<8x128xf32>
    %156 = arith.mulf %155, %154 : vector<8x128xf32>
    %cst_40 = arith.constant 5.000000e-01 : f32
    %157 = vector.broadcast %cst_40 : f32 to vector<8x128xf32>
    %158 = arith.addf %156, %157 : vector<8x128xf32>
    %159 = math.tanh %151 : vector<8x128xf32>
    %160 = vector.extract_strided_slice %158 {offsets = [0, 0], sizes = [8, 32], strides = [1, 1]} : vector<8x128xf32> to vector<8x32xf32>
    %161 = vector.extract_strided_slice %158 {offsets = [0, 32], sizes = [8, 32], strides = [1, 1]} : vector<8x128xf32> to vector<8x32xf32>
    %162 = vector.extract_strided_slice %159 {offsets = [0, 64], sizes = [8, 32], strides = [1, 1]} : vector<8x128xf32> to vector<8x32xf32>
    %163 = vector.extract_strided_slice %158 {offsets = [0, 96], sizes = [8, 32], strides = [1, 1]} : vector<8x128xf32> to vector<8x32xf32>
    %164 = arith.mulf %161, %146 : vector<8x32xf32>
    %165 = arith.mulf %160, %162 : vector<8x32xf32>
    %166 = arith.addf %164, %165 : vector<8x32xf32>
    %167 = math.tanh %166 : vector<8x32xf32>
    %168 = arith.mulf %163, %167 : vector<8x32xf32>
    %cst_41 = arith.constant 1.000000e+00 : f32
    %169 = vector.broadcast %cst_41 : f32 to vector<8x32xf32>
    %170 = arith.cmpf ogt, %168, %169 : vector<8x32xf32>
    %171 = arith.extui %170 : vector<8x32xi1> to vector<8x32xi32>
    %172 = arith.sitofp %171 : vector<8x32xi32> to vector<8x32xf32>
    %c0_42 = arith.constant 0 : index
    %c0_43 = arith.constant 0 : index
    %173 = vector.load %arg5[%c0_42, %c0_43] : memref<32x128xf32, #tpu.memory_space<vmem>>, vector<32x128xf32>
    %cst_44 = arith.constant dense<0.000000e+00> : vector<8x128xf32>
    %174 = tpu.matmul %172, %173, %cst_44 {dimension_numbers = #tpu.dot_dimension_numbers<[1], [0], [0], [1], [0, 0, 1, 1], [], []>} : vector<8x32xf32>, vector<32x128xf32>, vector<8x128xf32> -> vector<8x128xf32>
    %c0_45 = arith.constant 0 : index
    %c0_46 = arith.constant 0 : index
    %175 = vector.load %arg6[%c0_45, %c0_46] : memref<1x128xf32, #tpu.memory_space<vmem>>, vector<1x128xf32>
    %176 = vector.broadcast %175 : vector<1x128xf32> to vector<8x128xf32>
    %177 = arith.addf %174, %176 : vector<8x128xf32>
    %c0_47 = arith.constant 0 : index
    %c0_48 = arith.constant 0 : index
    %178 = vector.load %arg7[%c0_47, %c0_48] : memref<8x128xf32, #tpu.memory_space<vmem>>, vector<8x128xf32>
    tpu.vector_store %arg7[%c0_47, %c0_48], %177 {strides = array<i32>} : memref<8x128xf32, #tpu.memory_space<vmem>>, vector<8x128xf32>,
    %cst_49 = arith.constant 0.000000e+00 : f32
    %179 = vector.broadcast %cst_49 : f32 to vector<8x96xf32>
    %180 = tpu.concatenate %168, %179 in 1 : vector<8x32xf32>, vector<8x96xf32> -> vector<8x128xf32>
    %c0_50 = arith.constant 0 : index
    %c0_51 = arith.constant 0 : index
    %181 = vector.load %arg8[%c0_50, %c0_51] : memref<8x128xf32, #tpu.memory_space<vmem>>, vector<8x128xf32>
    tpu.vector_store %arg8[%c0_50, %c0_51], %180 {strides = array<i32>} : memref<8x128xf32, #tpu.memory_space<vmem>>, vector<8x128xf32>,
    return
  }
  func.func @transform_0(%arg0: i32) -> (i32, i32) {
    %c0_i32 = arith.constant 0 : i32
    %c0_i32_0 = arith.constant 0 : i32
    %c0_i32_1 = arith.constant 0 : i32
    return %c0_i32, %c0_i32_0 : i32, i32
  }
  func.func @transform_1(%arg0: i32) -> (i32, i32) {
    %c0_i32 = arith.constant 0 : i32
    %c0_i32_0 = arith.constant 0 : i32
    %c0_i32_1 = arith.constant 0 : i32
    return %c0_i32, %c0_i32_0 : i32, i32
  }
  func.func @transform_2(%arg0: i32) -> (i32, i32) {
    %c0_i32 = arith.constant 0 : i32
    %c0_i32_0 = arith.constant 0 : i32
    %c0_i32_1 = arith.constant 0 : i32
    return %c0_i32, %c0_i32_0 : i32, i32
  }
  func.func @transform_3(%arg0: i32) -> (i32, i32) {
    %c0_i32 = arith.constant 0 : i32
    %c0_i32_0 = arith.constant 0 : i32
    %c0_i32_1 = arith.constant 0 : i32
    return %c0_i32, %c0_i32_0 : i32, i32
  }
  func.func @transform_4(%arg0: i32) -> (i32, i32) {
    %c0_i32 = arith.constant 0 : i32
    %c0_i32_0 = arith.constant 0 : i32
    %c0_i32_1 = arith.constant 0 : i32
    return %c0_i32, %c0_i32_0 : i32, i32
  }
  func.func @transform_5(%arg0: i32) -> (i32, i32) {
    %c0_i32 = arith.constant 0 : i32
    %c0_i32_0 = arith.constant 0 : i32
    %c0_i32_1 = arith.constant 0 : i32
    return %c0_i32, %c0_i32_0 : i32, i32
  }
  func.func @transform_6(%arg0: i32) -> (i32, i32) {
    %c0_i32 = arith.constant 0 : i32
    %c0_i32_0 = arith.constant 0 : i32
    %c0_i32_1 = arith.constant 0 : i32
    return %c0_i32, %c0_i32_0 : i32, i32
  }
  func.func @transform_7(%arg0: i32) -> (i32, i32) {
    %c0_i32 = arith.constant 0 : i32
    %c0_i32_0 = arith.constant 0 : i32
    %c0_i32_1 = arith.constant 0 : i32
    return %c0_i32, %c0_i32_0 : i32, i32
  }
}

</mosaic_0001>

<bundles_post_ra>
// kernel: snn_lstm_forward.1
= control target key start
LH: loop header
LB: loop body
LE: loop exit
PB: predicated region body
PF: predicated region fallthrough
CT: control target
= control target key end

     0   :  { %13 = vsyncpa [#allocation3], 0  ;;  %v1372_v3 = vmov 0.0   ;;  %vm48_vm0 = vcmask 130048   ;;  %s1652_s0 = inlined_call_operand.vmem [shape: f32[64,16], index: 0, kind: input, shape index: {}]   ;;  %s1653_s1 = inlined_call_operand.vmem [shape: f32[16,128], index: 1, kind: input, shape index: {}]   ;;  %s1654_s2 = inlined_call_operand.vmem [shape: f32[32,128], index: 2, kind: input, shape index: {}]   ;;  %s1655_s3 = inlined_call_operand.vmem [shape: f32[1,128], index: 3, kind: input, shape index: {}]   ;;  %s1656_s4 = inlined_call_operand.vmem [shape: f32[32,128], index: 4, kind: input, shape index: {}]   ;;  %s1657_s5 = inlined_call_operand.vmem [shape: f32[1,128], index: 5, kind: input, shape index: {}]   ;;  %s1658_s6 = inlined_call_operand.hbm [shape: f32[8,128], index: 6, kind: output, shape index: {0}]   ;;  %s1659_s7 = inlined_call_operand.hbm [shape: f32[8,128], index: 7, kind: output, shape index: {1}]  }
   0x1   :  { %v28_v0 = vld [vmem:[%s1653_s1 + $0x8] sm:$0xff]  ;;  %v1424_v1 = vld [vmem:[%s1654_s2 + $0x18] sm:$0xff]  ;;  %v27_v2 = vld [vmem:[%s1653_s1] sm:$0xff]  ;;  %1175 = vmatprep.subr.mxu1 %v1372_v3 }
   0x2   :  { %1159 = vmatprep.subr.mxu0 %v28_v0  ;;  %v34_v4 = vld [vmem:[%s1652_s0] sm:$0xff]  ;;  %1176 = vmatpush3.msra.mxu1 %v1424_v1  ;;  %v1437_v5 = vld [vmem:[%s1654_s2 + $0x10] sm:$0xff]  ;;  %v35_v6 = vld [vmem:[%s1652_s0 + $0x8] sm:$0xff] }
   0x3   :  { %1160 = vmatpush3.msra.mxu0 %v28_v0 }
   0x4   :  { %14 = vsyncpa [#allocation5], 0  ;;  %1161 = vmatprep.subr.mxu0 %v27_v2  ;;  %1177 = vmatprep.subr.mxu1 %v1372_v3  ;;  %v1447_v7 = vld [vmem:[%s1654_s2 + $0x8] sm:$0xff]  ;;  %v1455_v8 = vld [vmem:[%s1654_s2] sm:$0xff]  ;;  %vm1373_vm1 = vmmov 0   ;;  %s1374_s17 = smov 64  }
   0x5   :  { %1162 = vmatpush3.msra.mxu0 %v27_v2  ;;  %1163 = vmatprep.mubr.msk.f32.mxu0 %vm48_vm0, %v34_v4  ;;  %v1486_v10 = vld [vmem:[%s1655_s3] ss:$0 sm:$0xff]  ;;  %s1375_s3 = smov 32   ;;  %vm178_vm2 = vcmask 261120   ;;  %v36_v44 = vld [vmem:[%s1652_s0 + $0x10] sm:$0xff]  ;;  %v37_v45 = vld [vmem:[%s1652_s0 + $0x18] sm:$0xff] }
   0x6   :  { %1178 = vmatpush3.msra.mxu1 %v1437_v5  ;;  %1164 = vmatmul.mubr.msk.f32.vlgmr.msra.gmra.mxu0 %vm48_vm0, %v35_v6  ;;  %v38_v46 = vld [vmem:[%s1652_s0 + $0x20] sm:$0xff]  ;;  %v39_v47 = vld [vmem:[%s1652_s0 + $0x28] sm:$0xff]  ;;  %v40_v48 = vld [vmem:[%s1652_s0 + $0x30] sm:$0xff]  ;;  %s1376_s13 = smov [#allocation4]  }
   0x7   :  { %1179 = vmatprep.subr.mxu1 %v1372_v3  ;;  %1183 = vmatprep.mubr.msk.f32.mxu1 %vm1373_vm1, %v1372_v3  ;;  %v41_v49 = vld [vmem:[%s1652_s0 + $0x38] sm:$0xff]  ;;  %s1073_s14 = sshll.u32 %s1376_s13, 4  ;;  %s1074_s14 = int_to_ptr.vmem [resolvable:$true] %s1073_s14 }
   0x8   :  { %1180 = vmatpush3.msra.mxu1 %v1447_v7  ;;  %1197 = vmatprep.subr.mxu0 %v1372_v3  ;;  %p1333_p1 = scmp.lt.s32.totalorder %s1074_s14, %s1074_s14 }
   0x9   :  { %1181 = vmatprep.subr.mxu1 %v1372_v3  ;;  %1198 = vmatpush3.msra.mxu0 %v1424_v1 }
   0xa   :  { %1182 = vmatpush3.msra.mxu1 %v1455_v8  ;;  %1199 = vmatprep.subr.mxu0 %v1372_v3 }
   0xb   :  { %1184 = vmatmul.mubr.f32.vlgmr.msra.gmra.mxu1 %v1372_v3  ;;  %1186 = vmatprep.subr.mxu1 %v1372_v3 }
   0xc   :  { %1187 = vmatpush3.msra.mxu1 %v1424_v1  ;;  %1194 = vmatprep.mubr.msk.f32.mxu1 %vm1373_vm1, %v1372_v3 }
   0xd   :  { %1188 = vmatprep.subr.mxu1 %v1372_v3  ;;  %1200 = vmatpush3.msra.mxu0 %v1437_v5 }
   0xe   :  { %1189 = vmatpush3.msra.mxu1 %v1437_v5  ;;  %1201 = vmatprep.subr.mxu0 %v1372_v3 }
   0xf   :  { %1190 = vmatprep.subr.mxu1 %v1372_v3  ;;  %1202 = vmatpush3.msra.mxu0 %v1447_v7 }
  0x10   :  { %1191 = vmatpush3.msra.mxu1 %v1447_v7  ;;  %1203 = vmatprep.subr.mxu0 %v1372_v3 }
  0x11   :  { %1192 = vmatprep.subr.mxu1 %v1372_v3  ;;  %1204 = vmatpush3.msra.mxu0 %v1455_v8 }
  0x12   :  { %1193 = vmatpush3.msra.mxu1 %v1455_v8  ;;  %1219 = vmatprep.subr.mxu0 %v1372_v3 }
  0x13   :  { %1208 = vmatprep.subr.mxu1 %v1372_v3  ;;  %1166 = vmatprep.mubr.msk.f32.mxu0 %vm48_vm0, %v36_v44 }
  0x14   :  { %1167 = vmatmul.mubr.msk.f32.gmra.mxu0 %vm48_vm0, %v37_v45 }
  0x15   :  { %1169 = vmatprep.mubr.msk.f32.mxu0 %vm48_vm0, %v38_v46 }
  0x18   :  { %1170 = vmatmul.mubr.msk.f32.gmra.mxu0 %vm48_vm0, %v39_v47 }
  0x19   :  { %1172 = vmatprep.mubr.msk.f32.mxu0 %vm48_vm0, %v40_v48 }
  0x1c   :  { %1173 = vmatmul.mubr.msk.f32.gmra.mxu0 %vm48_vm0, %v41_v49 }
  0x1d   :  { %1205 = vmatprep.mubr.msk.f32.mxu0 %vm1373_vm1, %v1372_v3 }
  0xc6   :  { %v1165_v9 = vpop.f32.mrf.mxu0 }
  0xc7   :  { %v145_v30 = vadd.f32 %v1165_v9, %v1486_v10 }
  0xc8   :  { %v139_v11 = vpop.f32.mrf.mxu0 }
  0xc9   :  { %v140_v12 = vadd.f32 %v1486_v10, %v139_v11 }
  0xcb   :  { %v248_v13 = vpop.f32.mrf.mxu1 }
  0xcc   :  { %v252_v14 = vadd.f32 %v248_v13, %v140_v12 }
  0xcd   :  { %v1185_v15 = vpop.f32.mrf.mxu1 }
  0xce   :  { %1280 = vtanh.f32 %v252_v14  ;;  %v253_v17 = vmul.f32 0.5, %v252_v14 }
  0xd0   :  { %1282 = vtanh.f32 %v253_v17 }
  0xd4   :  { %v1168_v54 = vpop.f32.mrf.mxu0 }
  0xd6   :  { %v149_v55 = vpop.f32.mrf.mxu0 }
  0xd7   :  { %v150_v60 = vadd.f32 %v1486_v10, %v149_v55 }
  0xd8   :  { %v1546_v56 = vpop.f32.mrf.mxu0 }
  0xda   :  { %v1548_v57 = vpop.f32.mrf.mxu0 }
  0xdb   :  { %v1281_v16 = vpop.eup %1280 }
  0xdc   :  { %260 = vrot.lane.b32.xlu0 %v1281_v16, %s1374_s17  ;;  %v1550_v58 = vpop.f32.mrf.mxu0 }
  0xdd   :  { %v1283_v18 = vpop.eup %1282 }
  0xde   :  { %v255_v19 = vmul.f32 0.5, %v1283_v18  ;;  %v1552_v59 = vpop.f32.mrf.mxu0 }
  0xe0   :  { %v256_v20 = vadd.f32 0.5, %v255_v19 }
  0xe2   :  { %v258_v23 = vmul.f32 0.0, %v256_v20 }
 0x14e   :  { %v261_v21 = vpop.permute.xlu0 %260 }
 0x14f   :  { %v263_v22 = vmul.f32 %v261_v21, %v256_v20 }
 0x151   :  { %265 = vrot.lane.b32.xlu0 %v263_v22, %s1375_s3 }
 0x1c3   :  { %v266_v24 = vpop.permute.xlu0 %265 }
 0x1c4   :  { %v268_v25 = vadd.f32 %v266_v24, %v258_v23 }
 0x1c6   :  { %1284 = vtanh.f32 %v268_v25 }
 0x1d3   :  { %v1285_v26 = vpop.eup %1284 }
 0x1d4   :  { %271 = vrot.lane.b32.xlu1 %v1285_v26, %s1374_s17 }
 0x246   :  { %v272_v27 = vpop.permute.xlu1 %271 }
 0x247   :  { %v274_v28 = vmul.f32 %v272_v27, %v256_v20  ;;  %v155_v20 = vadd.f32 %v1168_v54, %v1486_v10 }
 0x249   :  { %276 = vrot.lane.b32.xlu1 %v274_v28, %s1375_s3 }
 0x2bb   :  { %v277_v29 = vpop.permute.xlu1 %276 }
 0x2bc   :  { %1195 = vmatmul.mubr.msk.f32.vlgmr.msra.gmra.mxu1 %vm178_vm2, %v277_v29 }
 0x2bd   :  { %1209 = vmatpush3.msra.mxu1 %v1424_v1  ;;  %1216 = vmatprep.mubr.msk.f32.mxu1 %vm1373_vm1, %v1372_v3 }
 0x2be   :  { %1210 = vmatprep.subr.mxu1 %v1372_v3 }
 0x2bf   :  { %1211 = vmatpush3.msra.mxu1 %v1437_v5 }
 0x2c0   :  { %1212 = vmatprep.subr.mxu1 %v1372_v3 }
 0x2c1   :  { %1213 = vmatpush3.msra.mxu1 %v1447_v7 }
 0x2c2   :  { %1214 = vmatprep.subr.mxu1 %v1372_v3 }
 0x2c3   :  { %1215 = vmatpush3.msra.mxu1 %v1455_v8 }
 0x2c4   :  { %1230 = vmatprep.subr.mxu1 %v1372_v3 }
 0x37c   :  { %v346_v31 = vpop.f32.mrf.mxu1 }
 0x37d   :  { %v350_v32 = vadd.f32 %v346_v31, %v145_v30 }
 0x37e   :  { %v1196_v33 = vpop.f32.mrf.mxu1 }
 0x37f   :  { %1286 = vtanh.f32 %v350_v32  ;;  %v351_v35 = vmul.f32 0.5, %v350_v32 }
 0x381   :  { %1288 = vtanh.f32 %v351_v35 }
 0x38c   :  { %v1287_v34 = vpop.eup %1286 }
 0x38d   :  { %358 = vrot.lane.b32.xlu0 %v1287_v34, %s1374_s17 }
 0x38e   :  { %v1289_v36 = vpop.eup %1288 }
 0x38f   :  { %v353_v37 = vmul.f32 0.5, %v1289_v36 }
 0x391   :  { %v354_v38 = vadd.f32 0.5, %v353_v37 }
 0x393   :  { %v356_v41 = vmul.f32 %v354_v38, %v268_v25 }
 0x3ff   :  { %v359_v39 = vpop.permute.xlu0 %358 }
 0x400   :  { %v361_v40 = vmul.f32 %v359_v39, %v354_v38 }
 0x402   :  { %363 = vrot.lane.b32.xlu1 %v361_v40, %s1375_s3 }
 0x474   :  { %v364_v42 = vpop.permute.xlu1 %363 }
 0x475   :  { %v366_v43 = vadd.f32 %v364_v42, %v356_v41 }
 0x477   :  { %1290 = vtanh.f32 %v366_v43 }
 0x484   :  { %v1291_v50 = vpop.eup %1290 }
 0x485   :  { %369 = vrot.lane.b32.xlu0 %v1291_v50, %s1374_s17 }
 0x4f7   :  { %v370_v51 = vpop.permute.xlu0 %369 }
 0x4f8   :  { %v372_v52 = vmul.f32 %v370_v51, %v354_v38  ;;  %v160_v38 = vadd.f32 %v1486_v10, %v1548_v57  ;;  %v165_v57 = vadd.f32 %v1546_v56, %v1486_v10 }
 0x4fa   :  { %374 = vrot.lane.b32.xlu1 %v372_v52, %s1375_s3 }
 0x56c   :  { %v375_v53 = vpop.permute.xlu1 %374 }
 0x56d   :  { %1206 = vmatmul.mubr.msk.f32.vlgmr.msra.gmra.mxu0 %vm178_vm2, %v375_v53 }
 0x56e   :  { %1220 = vmatpush3.msra.mxu0 %v1424_v1  ;;  %1227 = vmatprep.mubr.msk.f32.mxu0 %vm1373_vm1, %v1372_v3 }
 0x56f   :  { %1221 = vmatprep.subr.mxu0 %v1372_v3 }
 0x570   :  { %1222 = vmatpush3.msra.mxu0 %v1437_v5 }
 0x571   :  { %1223 = vmatprep.subr.mxu0 %v1372_v3 }
 0x572   :  { %1224 = vmatpush3.msra.mxu0 %v1447_v7 }
 0x573   :  { %1225 = vmatprep.subr.mxu0 %v1372_v3 }
 0x574   :  { %1226 = vmatpush3.msra.mxu0 %v1455_v8 }
 0x575   :  { %1241 = vmatprep.subr.mxu0 %v1372_v3 }
 0x62d   :  { %v444_v61 = vpop.f32.mrf.mxu0 }
 0x62e   :  { %v448_v62 = vadd.f32 %v444_v61, %v150_v60 }
 0x62f   :  { %v1207_v63 = vpop.f32.mrf.mxu0 }
 0x630   :  { %1292 = vtanh.f32 %v448_v62  ;;  %v449_v2 = vmul.f32 0.5, %v448_v62 }
 0x632   :  { %1294 = vtanh.f32 %v449_v2 }
 0x63d   :  { %v1293_v0 = vpop.eup %1292 }
 0x63e   :  { %456 = vrot.lane.b32.xlu0 %v1293_v0, %s1374_s17 }
 0x63f   :  { %v1295_v4 = vpop.eup %1294 }
 0x640   :  { %v451_v6 = vmul.f32 0.5, %v1295_v4 }
 0x642   :  { %v452_v9 = vadd.f32 0.5, %v451_v6 }
 0x644   :  { %v454_v13 = vmul.f32 %v452_v9, %v366_v43 }
 0x6b0   :  { %v457_v11 = vpop.permute.xlu0 %456 }
 0x6b1   :  { %v459_v12 = vmul.f32 %v457_v11, %v452_v9 }
 0x6b3   :  { %461 = vrot.lane.b32.xlu1 %v459_v12, %s1375_s3 }
 0x725   :  { %v462_v14 = vpop.permute.xlu1 %461 }
 0x726   :  { %v464_v15 = vadd.f32 %v462_v14, %v454_v13  ;;  %v170_v14 = vadd.f32 %v1486_v10, %v1552_v59 }
 0x728   :  { %1296 = vtanh.f32 %v464_v15 }
 0x735   :  { %v1297_v16 = vpop.eup %1296 }
 0x736   :  { %467 = vrot.lane.b32.xlu0 %v1297_v16, %s1374_s17 }
 0x7a8   :  { %v468_v17 = vpop.permute.xlu0 %467 }
 0x7a9   :  { %v470_v18 = vmul.f32 %v468_v17, %v452_v9 }
 0x7ab   :  { %472 = vrot.lane.b32.xlu1 %v470_v18, %s1375_s3 }
 0x81d   :  { %v473_v19 = vpop.permute.xlu1 %472 }
 0x81e   :  { %1217 = vmatmul.mubr.msk.f32.vlgmr.msra.gmra.mxu1 %vm178_vm2, %v473_v19 }
 0x81f   :  { %1231 = vmatpush3.msra.mxu1 %v1424_v1  ;;  %1238 = vmatprep.mubr.msk.f32.mxu1 %vm1373_vm1, %v1372_v3 }
 0x820   :  { %1232 = vmatprep.subr.mxu1 %v1372_v3 }
 0x821   :  { %1233 = vmatpush3.msra.mxu1 %v1437_v5 }
 0x822   :  { %1234 = vmatprep.subr.mxu1 %v1372_v3 }
 0x823   :  { %1235 = vmatpush3.msra.mxu1 %v1447_v7 }
 0x824   :  { %1236 = vmatprep.subr.mxu1 %v1372_v3 }
 0x825   :  { %1237 = vmatpush3.msra.mxu1 %v1455_v8 }
 0x826   :  { %1252 = vmatprep.subr.mxu1 %v1372_v3 }
 0x8de   :  { %v542_v21 = vpop.f32.mrf.mxu1 }
 0x8df   :  { %v546_v22 = vadd.f32 %v542_v21, %v155_v20 }
 0x8e0   :  { %v1218_v23 = vpop.f32.mrf.mxu1 }
 0x8e1   :  { %1298 = vtanh.f32 %v546_v22  ;;  %v547_v25 = vmul.f32 0.5, %v546_v22 }
 0x8e3   :  { %1300 = vtanh.f32 %v547_v25 }
 0x8ee   :  { %v1299_v24 = vpop.eup %1298 }
 0x8ef   :  { %554 = vrot.lane.b32.xlu0 %v1299_v24, %s1374_s17 }
 0x8f0   :  { %v1301_v26 = vpop.eup %1300 }
 0x8f1   :  { %v549_v27 = vmul.f32 0.5, %v1301_v26 }
 0x8f3   :  { %v550_v28 = vadd.f32 0.5, %v549_v27 }
 0x8f5   :  { %v552_v31 = vmul.f32 %v550_v28, %v464_v15 }
 0x961   :  { %v555_v29 = vpop.permute.xlu0 %554 }
 0x962   :  { %v557_v30 = vmul.f32 %v555_v29, %v550_v28 }
 0x964   :  { %559 = vrot.lane.b32.xlu1 %v557_v30, %s1375_s3 }
 0x9d6   :  { %v560_v32 = vpop.permute.xlu1 %559 }
 0x9d7   :  { %v562_v33 = vadd.f32 %v560_v32, %v552_v31  ;;  %v175_v31 = vadd.f32 %v1550_v58, %v1486_v10  ;;  %v967_v10 = vld [vmem:[%s1656_s4 + $0x18] sm:$0xff]  ;;  %v966_v58 = vld [vmem:[%s1656_s4 + $0x10] sm:$0xff] }
 0x9d9   :  { %1302 = vtanh.f32 %v562_v33 }
 0x9e6   :  { %v1303_v34 = vpop.eup %1302 }
 0x9e7   :  { %565 = vrot.lane.b32.xlu0 %v1303_v34, %s1374_s17 }
 0xa59   :  { %v566_v35 = vpop.permute.xlu0 %565 }
 0xa5a   :  { %v568_v36 = vmul.f32 %v566_v35, %v550_v28 }
 0xa5c   :  { %570 = vrot.lane.b32.xlu1 %v568_v36, %s1375_s3 }
 0xace   :  { %v571_v37 = vpop.permute.xlu1 %570 }
 0xacf   :  { %1228 = vmatmul.mubr.msk.f32.vlgmr.msra.gmra.mxu0 %vm178_vm2, %v571_v37 }
 0xad0   :  { %1242 = vmatpush3.msra.mxu0 %v1424_v1  ;;  %1249 = vmatprep.mubr.msk.f32.mxu0 %vm1373_vm1, %v1372_v3 }
 0xad1   :  { %1243 = vmatprep.subr.mxu0 %v1372_v3 }
 0xad2   :  { %1244 = vmatpush3.msra.mxu0 %v1437_v5 }
 0xad3   :  { %1245 = vmatprep.subr.mxu0 %v1372_v3 }
 0xad4   :  { %1246 = vmatpush3.msra.mxu0 %v1447_v7 }
 0xad5   :  { %1247 = vmatprep.subr.mxu0 %v1372_v3 }
 0xad6   :  { %1248 = vmatpush3.msra.mxu0 %v1455_v8 }
 0xad7   :  { %1263 = vmatprep.subr.mxu0 %v1372_v3 }
 0xb8f   :  { %v640_v39 = vpop.f32.mrf.mxu0 }
 0xb90   :  { %v644_v40 = vadd.f32 %v640_v39, %v160_v38 }
 0xb91   :  { %v1229_v41 = vpop.f32.mrf.mxu0 }
 0xb92   :  { %1304 = vtanh.f32 %v644_v40  ;;  %v645_v43 = vmul.f32 0.5, %v644_v40 }
 0xb94   :  { %1306 = vtanh.f32 %v645_v43 }
 0xb9f   :  { %v1305_v42 = vpop.eup %1304 }
 0xba0   :  { %652 = vrot.lane.b32.xlu0 %v1305_v42, %s1374_s17 }
 0xba1   :  { %v1307_v44 = vpop.eup %1306 }
 0xba2   :  { %v647_v45 = vmul.f32 0.5, %v1307_v44 }
 0xba4   :  { %v648_v46 = vadd.f32 0.5, %v647_v45  ;;  %v965_v45 = vld [vmem:[%s1656_s4 + $0x8] sm:$0xff] }
 0xba6   :  { %v650_v49 = vmul.f32 %v648_v46, %v562_v33 }
 0xc12   :  { %v653_v47 = vpop.permute.xlu0 %652 }
 0xc13   :  { %v655_v48 = vmul.f32 %v653_v47, %v648_v46  ;;  %v964_v47 = vld [vmem:[%s1656_s4] sm:$0xff]  ;;  %s1328_s4 = scalar_lea.vmem %s1074_s14, 128 }
 0xc14   :  { %p1329_p0 = scmp.ne.s32.totalorder %s1074_s14, %s1328_s4  ;;  %p1334_p2 = scmp.lt.s32.totalorder %s1328_s4, %s1328_s4 }
 0xc15   :  { %657 = vrot.lane.b32.xlu1 %v655_v48, %s1375_s3 }
 0xc16   :  { %p1335_p3 = por %p1334_p2, %p1333_p1 }
 0xc18   :  { %p1336_p4 = pnand %p1335_p3, %p1329_p0 }
 0xc87   :  { %v658_v50 = vpop.permute.xlu1 %657 }
 0xc88   :  { %v660_v51 = vadd.f32 %v658_v50, %v650_v49 }
 0xc8a   :  { %1308 = vtanh.f32 %v660_v51 }
 0xc97   :  { %v1309_v52 = vpop.eup %1308 }
 0xc98   :  { %663 = vrot.lane.b32.xlu0 %v1309_v52, %s1374_s17 }
 0xd0a   :  { %v664_v53 = vpop.permute.xlu0 %663 }
 0xd0b   :  { %v666_v54 = vmul.f32 %v664_v53, %v648_v46 }
 0xd0d   :  { %668 = vrot.lane.b32.xlu1 %v666_v54, %s1375_s3 }
 0xd7f   :  { %v669_v55 = vpop.permute.xlu1 %668 }
 0xd80   :  { %1239 = vmatmul.mubr.msk.f32.vlgmr.msra.gmra.mxu1 %vm178_vm2, %v669_v55 }
 0xd81   :  { %1253 = vmatpush3.msra.mxu1 %v1424_v1  ;;  %1260 = vmatprep.mubr.msk.f32.mxu1 %vm1373_vm1, %v1372_v3 }
 0xd82   :  { %1254 = vmatprep.subr.mxu1 %v1372_v3 }
 0xd83   :  { %1255 = vmatpush3.msra.mxu1 %v1437_v5 }
 0xd84   :  { %1256 = vmatprep.subr.mxu1 %v1372_v3 }
 0xd85   :  { %1257 = vmatpush3.msra.mxu1 %v1447_v7 }
 0xd86   :  { %1258 = vmatprep.subr.mxu1 %v1372_v3 }
 0xd87   :  { %1259 = vmatpush3.msra.mxu1 %v1455_v8 }
 0xe40   :  { %v738_v60 = vpop.f32.mrf.mxu1 }
 0xe41   :  { %v742_v1 = vadd.f32 %v738_v60, %v165_v57 }
 0xe42   :  { %v1240_v61 = vpop.f32.mrf.mxu1 }
 0xe43   :  { %1310 = vtanh.f32 %v742_v1  ;;  %v743_v63 = vmul.f32 0.5, %v742_v1 }
 0xe45   :  { %1312 = vtanh.f32 %v743_v63 }
 0xe50   :  { %v1311_v62 = vpop.eup %1310 }
 0xe51   :  { %750 = vrot.lane.b32.xlu0 %v1311_v62, %s1374_s17 }
 0xe52   :  { %v1313_v5 = vpop.eup %1312 }
 0xe53   :  { %v745_v0 = vmul.f32 0.5, %v1313_v5 }
 0xe55   :  { %v746_v2 = vadd.f32 0.5, %v745_v0 }
 0xe57   :  { %v748_v8 = vmul.f32 %v746_v2, %v660_v51 }
 0xec3   :  { %v751_v7 = vpop.permute.xlu0 %750 }
 0xec4   :  { %v753_v4 = vmul.f32 %v751_v7, %v746_v2 }
 0xec6   :  { %755 = vrot.lane.b32.xlu1 %v753_v4, %s1375_s3 }
 0xf38   :  { %v756_v6 = vpop.permute.xlu1 %755 }
 0xf39   :  { %v758_v9 = vadd.f32 %v756_v6, %v748_v8 }
 0xf3b   :  { %1314 = vtanh.f32 %v758_v9 }
 0xf48   :  { %v1315_v56 = vpop.eup %1314 }
 0xf49   :  { %761 = vrot.lane.b32.xlu0 %v1315_v56, %s1374_s17 }
 0xfbb   :  { %v762_v11 = vpop.permute.xlu0 %761 }
 0xfbc   :  { %v764_v12 = vmul.f32 %v762_v11, %v746_v2 }
 0xfbe   :  { %766 = vrot.lane.b32.xlu1 %v764_v12, %s1375_s3 }
0x1030   :  { %v767_v13 = vpop.permute.xlu1 %766 }
0x1031   :  { %1250 = vmatmul.mubr.msk.f32.vlgmr.msra.gmra.mxu0 %vm178_vm2, %v767_v13 }
0x1032   :  { %1271 = vmatprep.mubr.msk.f32.mxu0 %vm1373_vm1, %v1372_v3  ;;  %1264 = vmatpush3.msra.mxu0 %v967_v10 }
0x1033   :  { %1265 = vmatprep.subr.mxu0 %v1372_v3 }
0x1034   :  { %1266 = vmatpush3.msra.mxu0 %v966_v58 }
0x1035   :  { %1267 = vmatprep.subr.mxu0 %v1372_v3 }
0x1036   :  { %1268 = vmatpush3.msra.mxu0 %v965_v45 }
0x1037   :  { %1269 = vmatprep.subr.mxu0 %v1372_v3 }
0x1038   :  { %1270 = vmatpush3.msra.mxu0 %v964_v47 }
0x10f1   :  { %v836_v15 = vpop.f32.mrf.mxu0 }
0x10f2   :  { %v840_v16 = vadd.f32 %v836_v15, %v170_v14 }
0x10f3   :  { %v1251_v17 = vpop.f32.mrf.mxu0 }
0x10f4   :  { %1316 = vtanh.f32 %v840_v16  ;;  %v841_v19 = vmul.f32 0.5, %v840_v16 }
0x10f6   :  { %1318 = vtanh.f32 %v841_v19 }
0x1101   :  { %v1317_v18 = vpop.eup %1316 }
0x1102   :  { %848 = vrot.lane.b32.xlu0 %v1317_v18, %s1374_s17 }
0x1103   :  { %v1319_v20 = vpop.eup %1318 }
0x1104   :  { %v843_v21 = vmul.f32 0.5, %v1319_v20 }
0x1106   :  { %v844_v22 = vadd.f32 0.5, %v843_v21 }
0x1108   :  { %v846_v25 = vmul.f32 %v844_v22, %v758_v9 }
0x1174   :  { %v849_v23 = vpop.permute.xlu0 %848 }
0x1175   :  { %v851_v24 = vmul.f32 %v849_v23, %v844_v22 }
0x1177   :  { %853 = vrot.lane.b32.xlu1 %v851_v24, %s1375_s3 }
0x11e9   :  { %v854_v26 = vpop.permute.xlu1 %853 }
0x11ea   :  { %v856_v27 = vadd.f32 %v854_v26, %v846_v25 }
0x11ec   :  { %1320 = vtanh.f32 %v856_v27 }
0x11f9   :  { %v1321_v59 = vpop.eup %1320 }
0x11fa   :  { %859 = vrot.lane.b32.xlu0 %v1321_v59, %s1374_s17 }
0x126c   :  { %v860_v28 = vpop.permute.xlu0 %859 }
0x126d   :  { %v862_v29 = vmul.f32 %v860_v28, %v844_v22 }
0x126f   :  { %864 = vrot.lane.b32.xlu1 %v862_v29, %s1375_s3 }
0x12e1   :  { %v865_v30 = vpop.permute.xlu1 %864 }
0x12e2   :  { %1261 = vmatmul.mubr.msk.f32.vlgmr.msra.gmra.mxu1 %vm178_vm2, %v865_v30 }
0x13a2   :  { %v934_v32 = vpop.f32.mrf.mxu1 }
0x13a3   :  { %v938_v33 = vadd.f32 %v934_v32, %v175_v31 }
0x13a4   :  { %v1262_v34 = vpop.f32.mrf.mxu1 }
0x13a5   :  { %1322 = vtanh.f32 %v938_v33  ;;  %v939_v36 = vmul.f32 0.5, %v938_v33 }
0x13a7   :  { %1324 = vtanh.f32 %v939_v36 }
0x13b2   :  { %v1323_v35 = vpop.eup %1322 }
0x13b3   :  { %946 = vrot.lane.b32.xlu0 %v1323_v35, %s1374_s17 }
0x13b4   :  { %v1325_v37 = vpop.eup %1324 }
0x13b5   :  { %v941_v38 = vmul.f32 0.5, %v1325_v37 }
0x13b7   :  { %v942_v39 = vadd.f32 0.5, %v941_v38 }
0x13b9   :  { %v944_v42 = vmul.f32 %v942_v39, %v856_v27 }
0x1425   :  { %v947_v40 = vpop.permute.xlu0 %946 }
0x1426   :  { %v949_v41 = vmul.f32 %v947_v40, %v942_v39 }
0x1428   :  { %951 = vrot.lane.b32.xlu1 %v949_v41, %s1375_s3 }
0x149a   :  { %v952_v43 = vpop.permute.xlu1 %951 }
0x149b   :  { %v954_v44 = vadd.f32 %v952_v43, %v944_v42 }
0x149d   :  { %1326 = vtanh.f32 %v954_v44 }
0x14aa   :  { %v1327_v46 = vpop.eup %1326 }
0x14ab   :  { %957 = vrot.lane.b32.xlu0 %v1327_v46, %s1374_s17 }
0x151d   :  { %v958_v48 = vpop.permute.xlu0 %957 }
0x151e   :  { %v960_v49 = vmul.f32 %v958_v48, %v942_v39 }
0x1520   :  { %vm961_vm3 = vcmp.gt.f32.partialorder %v960_v49, 1.0  ;;  %1052 = vrot.lane.b32.xlu0 %v960_v49, %s1375_s3 }
0x1521   :  { %v1101_v50 = vsel %vm961_vm3, 1.0, %v1372_v3 }
0x1522   :  { %976 = vrot.lane.b32.xlu1 %v1101_v50, %s1375_s3 }
0x1592   :  { %v1053_v51 = vpop.permute.xlu0 %1052 }
0x1593   :  { %v1055_v52 = vsel %vm178_vm2, %v1053_v51, 0.0 }
0x1594   :  { %1056 = vst [vmem:[#allocation4] sm:$0xff] %v1055_v52  ;;  %v977_v53 = vpop.permute.xlu1 %976 }
0x1595   :  { %1272 = vmatmul.mubr.msk.f32.vlgmr.msra.gmra.mxu0 %vm178_vm2, %v977_v53 }
0x1596   :  { %1339 = shalt.err (!%p1336_p4)
}
0x1597   :  { %1076 = dma.vmem_to_hbm [thread:$0]  %s1074_s14, 128, %s1659_s7, [#allocation5]   ;;  %v1102_v3 = vld [vmem:[%s1657_s5] ss:$0 sm:$0xff] }
0x1598   :  { %s1377_s3 = smov [#allocation2]  }
0x1599   :  { %s1063_s18 = sshll.u32 %s1377_s3, 4  ;;  %s1064_s18 = int_to_ptr.vmem [resolvable:$true] %s1063_s18 }
0x159a   :  { %s1348_s19 = scalar_lea.vmem %s1064_s18, 128  ;;  %p1353_p6 = scmp.lt.s32.totalorder %s1064_s18, %s1064_s18 }
0x159b   :  { %p1349_p5 = scmp.ne.s32.totalorder %s1064_s18, %s1348_s19  ;;  %p1354_p7 = scmp.lt.s32.totalorder %s1348_s19, %s1348_s19 }
0x159d   :  { %p1355_p8 = por %p1354_p7, %p1353_p6 }
0x159f   :  { %p1356_p9 = pnand %p1355_p8, %p1349_p5 }
0x1655   :  { %v1046_v54 = vpop.f32.mrf.mxu0 }
0x1656   :  { %v1047_v55 = vadd.f32 %v1102_v3, %v1046_v54 }
0x1657   :  { %v1273_v57 = vpop.f32.mrf.mxu0 }
0x1658   :  { %1050 = vst [vmem:[#allocation2] sm:$0xff] %v1047_v55 }
0x1659   :  { %1359 = shalt.err (!%p1356_p9)
}
0x165a   :  { %1066 = dma.vmem_to_hbm [thread:$0]  %s1064_s18, 128, %s1658_s6, [#allocation3]  }
0x165b   :  { %1368 = dma.done.wait [#allocation3], 128  }
0x165c   :  { %1369 = vsyncadd [#allocation3], 4294967168 }
0x165d   :  { %1370 = dma.done.wait [#allocation5], 128  }
0x165e   :  { %1371 = vsyncadd [#allocation5], 4294967168 }
0x165f   :  { %1083 = vsyncpa [#allocation3], 1 }
0x1660   :  { %1084 = vsyncpa [#allocation5], 1 }

</bundles_post_ra>
